<compile_context>
chip_gen: v5e
topology: v5e:2x2
jax: 0.10.0
libtpu: 0.0.40
codegen_flags: <defaults>
</compile_context>

<pallas_src>
import functools

import jax
import jax.numpy as jnp
from jax.experimental import pallas as pl
from jax.experimental.pallas import tpu as pltpu


# ----------------------------------------------------------------------------
# Fused Pallas kernel
# ----------------------------------------------------------------------------
def _cheb(x, Lmat, w_ref, b_ref, K, relu):
    """K-order Chebyshev graph conv for ALL batch samples at once.

    x     : (N, B*Fin)   batched node features (value)
    Lmat  : (N, N)       dense normalized adjacency (value)
    w_ref : (K*B*Fin, B*Fout) block-diag-stacked weight Ref
    b_ref : (1, B*Fout)  batch-tiled bias Ref or None
    """
    txs = [x]
    if K > 1:
        txs.append(jnp.dot(Lmat, x, preferred_element_type=jnp.float32))
    for _ in range(2, K):
        txs.append(2.0 * jnp.dot(Lmat, txs[-1],
                                 preferred_element_type=jnp.float32) - txs[-2])
    tx_cat = txs[0] if K == 1 else jnp.concatenate(txs, axis=1)   # (N, K*B*Fin)
    out = jnp.dot(tx_cat, w_ref[...], preferred_element_type=jnp.float32)
    if b_ref is not None:
        out = out + b_ref[...]
    if relu:
        out = jnp.maximum(out, 0.0)
    return out


def _fused_forward_kernel(*refs, L, Ks_enc, Ks_dec, B, Fb):
    """Whole ComaNet forward (all samples) in one grid-free invocation.

    Ref order (inputs): x, A[0..L-1], d[0..L-1], u[0..L-1],
                        convW[0..L-1], convb[0..L-1],
                        Wcat_enc, M_enc, S_enc, b_enc,
                        W_dec, b_dec, M_dec, S_dec,
                        deconvW[0..L-1], deconvb[0..L-2]
    Last ref is the output (N0, B*F0).
    """
    it = iter(refs[:-1])
    x_ref = next(it)
    A = [next(it) for _ in range(L)]
    d = [next(it) for _ in range(L)]
    u = [next(it) for _ in range(L)]
    cw = [next(it) for _ in range(L)]
    cb = [next(it) for _ in range(L)]
    wcat_enc = next(it)
    m_enc = next(it)
    s_enc = next(it)
    b_enc = next(it)
    w_dec = next(it)
    b_dec = next(it)
    m_dec = next(it)
    s_dec = next(it)
    dw = [next(it) for _ in range(L)]
    db = [next(it) for _ in range(L - 1)]
    o_ref = refs[-1]

    x = x_ref[...]                                   # (N0, B*F0)

    # ---- encoder: cheb conv -> pool, all levels, all samples ----------------
    for i in range(L):
        x = _cheb(x, A[i][...], cw[i], cb[i], Ks_enc[i], relu=True)
        # TODO(synk): replace the 0/1-selection matmul with an index gather at
        # production node counts (it is ~2 tiny MXU ops at toy sizes).
        x = jnp.dot(d[i][...], x, preferred_element_type=jnp.float32)

    # ---- bottleneck: per-sample flatten -> enc Linear -> dec Linear -> unflatten
    # (mask + fold matmuls reproduce the row-major flatten exactly, no
    #  in-kernel sublane<->lane reshape; B is small so the Python loop is cheap)
    z_rows = []
    for b in range(B):
        xb = x[:, b * Fb:(b + 1) * Fb]                               # (Nb, Fb)
        y = jnp.dot(xb, wcat_enc[...], preferred_element_type=jnp.float32)
        y = y * m_enc[...]                                           # keep row n in block n
        col = jnp.sum(y, axis=0, keepdims=True)                      # (1, Nb*z)
        zb = jnp.dot(col, s_enc[...], preferred_element_type=jnp.float32) + b_enc[...]
        z_rows.append(zb)                                            # (1, z)
    zmat = jnp.concatenate(z_rows, axis=0)                           # (B, z)

    h = jnp.dot(zmat, w_dec[...], preferred_element_type=jnp.float32) + b_dec[...]
    xblocks = []
    for b in range(B):
        hb = h[b:b + 1, :]                                           # (1, Nd*Fb)
        hm = m_dec[...] * hb                                         # (Nd, Nd*Fb)
        xblocks.append(jnp.dot(hm, s_dec[...],
                               preferred_element_type=jnp.float32))  # (Nd, Fb)
    x = jnp.concatenate(xblocks, axis=1)                             # (Nd, B*Fb)

    # ---- decoder: unpool -> cheb deconv, all levels, all samples ------------
    for i in range(L - 1):
        x = jnp.dot(u[L - 1 - i][...], x, preferred_element_type=jnp.float32)
        x = _cheb(x, A[L - 1 - i][...], dw[i], db[i], Ks_dec[i], relu=True)
    x = jnp.dot(u[0][...], x, preferred_element_type=jnp.float32)
    out = _cheb(x, A[0][...], dw[L - 1], None, Ks_dec[L - 1], relu=False)

    o_ref[...] = out


# ----------------------------------------------------------------------------
# ComaNet wrapper driving the single fused Pallas kernel
# ----------------------------------------------------------------------------
class ComaNetPallas:
    def __init__(self, d_mats, u_mats, A_norms, filters, K, z_dim, key):
        self.d_mats = [jnp.asarray(m, jnp.float32) for m in d_mats]
        self.u_mats = [jnp.asarray(m, jnp.float32) for m in u_mats]
        self.A_norms = [jnp.asarray(m, jnp.float32) for m in A_norms]
        self.filters = list(filters)
        self.K = list(K)
        self.z_dim = z_dim
        L = len(filters) - 1
        self.L = L
        self._cache = {}

        keys = iter(jax.random.split(key, 4 * L + 4))

        # encoder cheb convs: (K[i], filters[i], filters[i+1])
        self.conv_W, self.conv_b = [], []
        for i in range(L):
            self.conv_W.append(0.1 * jax.random.normal(
                next(keys), (K[i], filters[i], filters[i + 1]), jnp.float32))
            self.conv_b.append(jnp.zeros((filters[i + 1],), jnp.float32))
        self.Ks_enc = [K[i] for i in range(L)]

        # decoder cheb convs (mirrors the torch K[-i] indexing quirk; last bias=None)
        self.deconv_W, self.deconv_b, self.Ks_dec = [], [], []
        for i in range(L):
            k_i = K[-i] if i > 0 else K[0]
            self.Ks_dec.append(k_i)
            self.deconv_W.append(0.1 * jax.random.normal(
                next(keys), (k_i, filters[-i - 1], filters[-i - 2]), jnp.float32))
            self.deconv_b.append(jnp.zeros((filters[-i - 2],), jnp.float32))
        self.deconv_b[-1] = None

        Nb = self.d_mats[-1].shape[0]       # encoder bottleneck nodes
        Fb = filters[-1]
        Nd = self.u_mats[-1].shape[1]       # decoder bottleneck nodes
        self.Nb, self.Nd = Nb, Nd
        enc_in = Nb * Fb
        dec_out = Fb * Nd
        # stored as (in, out); torch Linear does x @ W.T + b with W (out, in)
        self.enc_W = 0.1 * jax.random.normal(next(keys), (enc_in, z_dim), jnp.float32)
        self.enc_b = jnp.zeros((z_dim,), jnp.float32)
        self.dec_W = 0.1 * jax.random.normal(next(keys), (z_dim, dec_out), jnp.float32)
        self.dec_b = jnp.zeros((dec_out,), jnp.float32)

    # ---- host-side constant prep (depends on batch size B) -------------------
    @staticmethod
    def _stack_cheb_weights(W, B):
        """(K, Fin, Fout) -> (K*B*Fin, B*Fout): per-order weights replicated
        block-diagonally over the batch and stacked along the contraction dim,
        so one dot covers all K orders and all B samples."""
        eye = jnp.eye(B, dtype=W.dtype)
        return jnp.concatenate([jnp.kron(eye, W[k]) for k in range(W.shape[0])],
                               axis=0)

    def _build_consts(self, B):
        L, Fb, z = self.L, self.filters[-1], self.z_dim
        Nb, Nd = self.Nb, self.Nd

        cw = [self._stack_cheb_weights(self.conv_W[i], B) for i in range(L)]
        cb = [jnp.tile(self.conv_b[i], B).reshape(1, -1) for i in range(L)]
        dw = [self._stack_cheb_weights(self.deconv_W[i], B) for i in range(L)]
        db = [jnp.tile(self.deconv_b[i], B).reshape(1, -1) for i in range(L - 1)]

        # flatten/unflatten helpers (exact row-major flatten via mask + fold)
        wcat_enc = (self.enc_W.reshape(Nb, Fb, z)
                    .transpose(1, 0, 2).reshape(Fb, Nb * z))                 # (Fb, Nb*z)
        m_enc = (jnp.arange(Nb * z)[None, :] // z
                 == jnp.arange(Nb)[:, None]).astype(jnp.float32)             # (Nb, Nb*z)
        s_enc = (jnp.arange(Nb * z)[:, None] % z
                 == jnp.arange(z)[None, :]).astype(jnp.float32)              # (Nb*z, z)
        m_dec = (jnp.arange(Nd * Fb)[None, :] // Fb
                 == jnp.arange(Nd)[:, None]).astype(jnp.float32)             # (Nd, Nd*Fb)
        s_dec = (jnp.arange(Nd * Fb)[:, None] % Fb
                 == jnp.arange(Fb)[None, :]).astype(jnp.float32)             # (Nd*Fb, Fb)

        return (list(self.A_norms[:L]) + list(self.d_mats) + list(self.u_mats)
                + cw + cb
                + [wcat_enc, m_enc, s_enc, self.enc_b.reshape(1, -1),
                   self.dec_W, self.dec_b.reshape(1, -1), m_dec, s_dec]
                + dw + db)

    def _cost_estimate(self, B, consts, io_bytes):
        def mm(m, k, n):
            return 2 * m * k * n
        f = self.filters
        nn = [self.d_mats[0].shape[1]] + [dd.shape[0] for dd in self.d_mats]
        flops = 0
        for i in range(self.L):
            N, Fin, Fout, Kk = nn[i], B * f[i], B * f[i + 1], self.Ks_enc[i]
            flops += (Kk - 1) * mm(N, N, Fin) + mm(N, Kk * Fin, Fout)
            flops += mm(nn[i + 1], N, Fout)
        Nb, Fb, z, Nd = self.Nb, f[-1], self.z_dim, self.Nd
        flops += B * (mm(Nb, Fb, Nb * z) + mm(1, Nb * z, z))
        flops += mm(B, z, Nd * Fb) + B * mm(Nd, Nd * Fb, Fb)
        dec_f = f[::-1]
        for i in range(self.L):
            uu = self.u_mats[self.L - 1 - i]
            N, M = uu.shape
            Fin, Fout, Kk = B * dec_f[i], B * dec_f[i + 1], self.Ks_dec[i]
            flops += mm(N, M, Fin) + (Kk - 1) * mm(N, N, Fin) + mm(N, Kk * Fin, Fout)
        bytes_acc = io_bytes + sum(int(c.size) * c.dtype.itemsize for c in consts)
        return pl.CostEstimate(flops=int(flops), transcendentals=0,
                               bytes_accessed=int(bytes_acc))

    def _prepare(self, B, io_bytes):
        if B not in self._cache:
            consts = self._build_consts(B)
            cost = self._cost_estimate(B, consts, io_bytes)
            self._cache[B] = (consts, cost)
        return self._cache[B]

    # ---- fused Pallas forward ------------------------------------------------
    def __call__(self, data):
        x = data["x"]                                   # (B, N0, F0)
        B, N0, F0 = x.shape
        consts, cost = self._prepare(B, 2 * int(x.size) * 4)

        # lane-dense layout change done host-side (XLA), not in-kernel
        x2d = jnp.transpose(x, (1, 0, 2)).reshape(N0, B * F0)   # (N0, B*F0)

        kernel = functools.partial(
            _fused_forward_kernel, L=self.L,
            Ks_enc=tuple(self.Ks_enc), Ks_dec=tuple(self.Ks_dec),
            B=B, Fb=self.filters[-1])

        vmem = pl.BlockSpec(memory_space=pltpu.MemorySpace.VMEM)
        out2d = pl.pallas_call(
            kernel,
            out_shape=jax.ShapeDtypeStruct((N0, B * F0), jnp.float32),
            in_specs=[vmem] * (1 + len(consts)),
            out_specs=vmem,
            compiler_params=pltpu.CompilerParams(
                vmem_limit_bytes=48 * 1024 * 1024),
            cost_estimate=cost,
        )(x2d, *consts)

        re_x = out2d.reshape(N0, B, F0).transpose(1, 0, 2)       # (B, N0, F0)
        return {"re_x": re_x}

    # ---- pure-JAX reference (for correctness check) ---------------------------
    @staticmethod
    def _cheb_ref(x, L, W, bias, relu, precision):
        K = W.shape[0]
        tx0 = x
        out = jnp.einsum("bnf,fg->bng", tx0, W[0], precision=precision)
        if K > 1:
            tx1 = jnp.einsum("mn,bnf->bmf", L, tx0, precision=precision)
            out = out + jnp.einsum("bnf,fg->bng", tx1, W[1], precision=precision)
        for k in range(2, K):
            tx2 = 2.0 * jnp.einsum("mn,bnf->bmf", L, tx1, precision=precision) - tx0
            out = out + jnp.einsum("bnf,fg->bng", tx2, W[k], precision=precision)
            tx0, tx1 = tx1, tx2
        if bias is not None:
            out = out + bias
        return jnp.maximum(out, 0.0) if relu else out

    def reference(self, data, precision=jax.lax.Precision.HIGHEST):
        x = data["x"]
        for i in range(len(self.conv_W)):
            x = self._cheb_ref(x, self.A_norms[i], self.conv_W[i],
                               self.conv_b[i], True, precision)
            x = jnp.einsum("mn,bnf->bmf", self.d_mats[i], x, precision=precision)
        x = x.reshape(x.shape[0], -1)
        z = jnp.dot(x, self.enc_W, precision=precision) + self.enc_b
        x = jnp.dot(z, self.dec_W, precision=precision) + self.dec_b
        x = x.reshape(x.shape[0], -1, self.filters[-1])
        n_deconv = len(self.deconv_W)
        for i in range(n_deconv - 1):
            x = jnp.einsum("mn,bnf->bmf", self.u_mats[-i - 1], x, precision=precision)
            x = self._cheb_ref(x, self.A_norms[-i - 2], self.deconv_W[i],
                               self.deconv_b[i], True, precision)
        x = jnp.einsum("mn,bnf->bmf", self.u_mats[0], x, precision=precision)
        return {"re_x": self._cheb_ref(x, self.A_norms[0], self.deconv_W[-1],
                                       None, False, precision)}


# ----------------------------------------------------------------------------
# Synthetic mesh hierarchy (deterministic)
# ----------------------------------------------------------------------------
def make_norm_adjacency(key, n):
    """Symmetric D^{-1/2} A D^{-1/2} for a random graph with a guaranteed ring."""
    a = (jax.random.uniform(key, (n, n)) < 0.3).astype(jnp.float32)
    a = jnp.maximum(a, a.T)
    ring = jnp.roll(jnp.eye(n, dtype=jnp.float32), 1, axis=1)
    a = jnp.maximum(a, jnp.maximum(ring, ring.T))
    a = a * (1.0 - jnp.eye(n, dtype=jnp.float32))      # remove self loops
    deg = a.sum(axis=1)
    dinv = jnp.where(deg > 0, 1.0 / jnp.sqrt(deg), 0.0)
    return dinv[:, None] * a * dinv[None, :]


if __name__ == "__main__":
    key = jax.random.PRNGKey(0)
    k_x, k_a0, k_a1, k_a2, k_u0, k_u1, k_params = jax.random.split(key, 7)

    # small CoMA-style hierarchy
    B = 2
    filters = [4, 8, 16]          # input feats -> 2 conv levels
    K = [3, 2]
    num_nodes = [32, 16, 8]       # mesh sizes per level (last = bottleneck mesh)
    z_dim = 8

    A_norms = [
        make_norm_adjacency(k_a0, num_nodes[0]),
        make_norm_adjacency(k_a1, num_nodes[1]),
        make_norm_adjacency(k_a2, num_nodes[2]),   # present but unused, as in CoMA
    ]
    # downsample: binary selection of every other vertex
    d_mats = []
    for i in range(2):
        m, n = num_nodes[i + 1], num_nodes[i]
        d = jnp.zeros((m, n), jnp.float32).at[jnp.arange(m), 2 * jnp.arange(m)].set(1.0)
        d_mats.append(d)
    # upsample: dense (stand-in for barycentric interpolation weights)
    u_mats = [
        0.3 * jax.random.normal(k_u0, (num_nodes[0], num_nodes[1]), jnp.float32),
        0.3 * jax.random.normal(k_u1, (num_nodes[1], num_nodes[2]), jnp.float32),
    ]

    model = ComaNetPallas(d_mats, u_mats, A_norms, filters, K, z_dim, k_params)

    x = jax.random.normal(k_x, (B, num_nodes[0], filters[0]), jnp.float32)
    data = {"x": x}

    out = model(data)
    re_x = jax.block_until_ready(out["re_x"])
    assert re_x.shape == (B, num_nodes[0], filters[0]), re_x.shape

    # Tightened check (was 1e-2): compare against a Precision.HIGHEST reference.
    # Tolerance is 1e-4 absolute, or 8x the spread between HIGHEST- and
    # DEFAULT-precision XLA references (whichever is larger), so the check stays
    # meaningful regardless of which f32 matmul algorithm the MXU path uses.
    ref_hi = jax.block_until_ready(
        model.reference(data, precision=jax.lax.Precision.HIGHEST)["re_x"])
    ref_lo = jax.block_until_ready(
        model.reference(data, precision=jax.lax.Precision.DEFAULT)["re_x"])
    max_err = float(jnp.max(jnp.abs(re_x - ref_hi)))
    tol = max(1e-4, 8.0 * float(jnp.max(jnp.abs(ref_hi - ref_lo))))
    assert max_err < tol, f"mismatch vs reference: {max_err} (tol {tol})"

    print("KERNEL_OK")
</pallas_src>

<mosaic_0001>
module attributes {stable_mosaic.version = 11 : i64} {
  func.func @_fused_forward_kernel(%arg0: memref<32x8xf32, #tpu.memory_space<vmem>>, %arg1: memref<32x32xf32, #tpu.memory_space<vmem>>, %arg2: memref<16x16xf32, #tpu.memory_space<vmem>>, %arg3: memref<16x32xf32, #tpu.memory_space<vmem>>, %arg4: memref<8x16xf32, #tpu.memory_space<vmem>>, %arg5: memref<32x16xf32, #tpu.memory_space<vmem>>, %arg6: memref<16x8xf32, #tpu.memory_space<vmem>>, %arg7: memref<24x16xf32, #tpu.memory_space<vmem>>, %arg8: memref<32x32xf32, #tpu.memory_space<vmem>>, %arg9: memref<1x16xf32, #tpu.memory_space<vmem>>, %arg10: memref<1x32xf32, #tpu.memory_space<vmem>>, %arg11: memref<16x64xf32, #tpu.memory_space<vmem>>, %arg12: memref<8x64xf32, #tpu.memory_space<vmem>>, %arg13: memref<64x8xf32, #tpu.memory_space<vmem>>, %arg14: memref<1x8xf32, #tpu.memory_space<vmem>>, %arg15: memref<8x128xf32, #tpu.memory_space<vmem>>, %arg16: memref<1x128xf32, #tpu.memory_space<vmem>>, %arg17: memref<8x128xf32, #tpu.memory_space<vmem>>, %arg18: memref<128x16xf32, #tpu.memory_space<vmem>>, %arg19: memref<96x16xf32, #tpu.memory_space<vmem>>, %arg20: memref<32x8xf32, #tpu.memory_space<vmem>>, %arg21: memref<1x16xf32, #tpu.memory_space<vmem>>, %arg22: memref<32x8xf32, #tpu.memory_space<vmem>>) attributes {dimension_semantics = [], scalar_prefetch = 0 : i64, scratch_operands = 0 : i64, tpu.core_type = #tpu.core_type<tc>} {
    %c0 = arith.constant 0 : index
    %c0_0 = arith.constant 0 : index
    %0 = vector.load %arg0[%c0, %c0_0] : memref<32x8xf32, #tpu.memory_space<vmem>>, vector<32x8xf32>
    %c0_1 = arith.constant 0 : index
    %c0_2 = arith.constant 0 : index
    %1 = vector.load %arg1[%c0_1, %c0_2] : memref<32x32xf32, #tpu.memory_space<vmem>>, vector<32x32xf32>
    %cst = arith.constant dense<0.000000e+00> : vector<32x8xf32>
    %2 = tpu.matmul %1, %0, %cst {dimension_numbers = #tpu.dot_dimension_numbers<[1], [0], [0], [1], [0, 0, 1, 1], [], []>} : vector<32x32xf32>, vector<32x8xf32>, vector<32x8xf32> -> vector<32x8xf32>
    %cst_3 = arith.constant dense<0.000000e+00> : vector<32x8xf32>
    %3 = tpu.matmul %1, %2, %cst_3 {dimension_numbers = #tpu.dot_dimension_numbers<[1], [0], [0], [1], [0, 0, 1, 1], [], []>} : vector<32x32xf32>, vector<32x8xf32>, vector<32x8xf32> -> vector<32x8xf32>
    %cst_4 = arith.constant 2.000000e+00 : f32
    %4 = vector.broadcast %cst_4 : f32 to vector<32x8xf32>
    %5 = arith.mulf %4, %3 : vector<32x8xf32>
    %6 = arith.subf %5, %0 : vector<32x8xf32>
    %7 = tpu.concatenate %0, %2, %6 in 1 : vector<32x8xf32>, vector<32x8xf32>, vector<32x8xf32> -> vector<32x24xf32>
    %c0_5 = arith.constant 0 : index
    %c0_6 = arith.constant 0 : index
    %8 = vector.load %arg7[%c0_5, %c0_6] : memref<24x16xf32, #tpu.memory_space<vmem>>, vector<24x16xf32>
    %cst_7 = arith.constant dense<0.000000e+00> : vector<32x16xf32>
    %9 = tpu.matmul %7, %8, %cst_7 {dimension_numbers = #tpu.dot_dimension_numbers<[1], [0], [0], [1], [0, 0, 1, 1], [], []>} : vector<32x24xf32>, vector<24x16xf32>, vector<32x16xf32> -> vector<32x16xf32>
    %c0_8 = arith.constant 0 : index
    %c0_9 = arith.constant 0 : index
    %10 = vector.load %arg9[%c0_8, %c0_9] : memref<1x16xf32, #tpu.memory_space<vmem>>, vector<1x16xf32>
    %11 = vector.broadcast %10 : vector<1x16xf32> to vector<32x16xf32>
    %12 = arith.addf %9, %11 : vector<32x16xf32>
    %cst_10 = arith.constant 0.000000e+00 : f32
    %13 = vector.broadcast %cst_10 : f32 to vector<32x16xf32>
    %14 = arith.maximumf %12, %13 : vector<32x16xf32>
    %c0_11 = arith.constant 0 : index
    %c0_12 = arith.constant 0 : index
    %15 = vector.load %arg3[%c0_11, %c0_12] : memref<16x32xf32, #tpu.memory_space<vmem>>, vector<16x32xf32>
    %cst_13 = arith.constant dense<0.000000e+00> : vector<16x16xf32>
    %16 = tpu.matmul %15, %14, %cst_13 {dimension_numbers = #tpu.dot_dimension_numbers<[1], [0], [0], [1], [0, 0, 1, 1], [], []>} : vector<16x32xf32>, vector<32x16xf32>, vector<16x16xf32> -> vector<16x16xf32>
    %c0_14 = arith.constant 0 : index
    %c0_15 = arith.constant 0 : index
    %17 = vector.load %arg2[%c0_14, %c0_15] : memref<16x16xf32, #tpu.memory_space<vmem>>, vector<16x16xf32>
    %cst_16 = arith.constant dense<0.000000e+00> : vector<16x16xf32>
    %18 = tpu.matmul %17, %16, %cst_16 {dimension_numbers = #tpu.dot_dimension_numbers<[1], [0], [0], [1], [0, 0, 1, 1], [], []>} : vector<16x16xf32>, vector<16x16xf32>, vector<16x16xf32> -> vector<16x16xf32>
    %19 = tpu.concatenate %16, %18 in 1 : vector<16x16xf32>, vector<16x16xf32> -> vector<16x32xf32>
    %c0_17 = arith.constant 0 : index
    %c0_18 = arith.constant 0 : index
    %20 = vector.load %arg8[%c0_17, %c0_18] : memref<32x32xf32, #tpu.memory_space<vmem>>, vector<32x32xf32>
    %cst_19 = arith.constant dense<0.000000e+00> : vector<16x32xf32>
    %21 = tpu.matmul %19, %20, %cst_19 {dimension_numbers = #tpu.dot_dimension_numbers<[1], [0], [0], [1], [0, 0, 1, 1], [], []>} : vector<16x32xf32>, vector<32x32xf32>, vector<16x32xf32> -> vector<16x32xf32>
    %c0_20 = arith.constant 0 : index
    %c0_21 = arith.constant 0 : index
    %22 = vector.load %arg10[%c0_20, %c0_21] : memref<1x32xf32, #tpu.memory_space<vmem>>, vector<1x32xf32>
    %23 = vector.broadcast %22 : vector<1x32xf32> to vector<16x32xf32>
    %24 = arith.addf %21, %23 : vector<16x32xf32>
    %cst_22 = arith.constant 0.000000e+00 : f32
    %25 = vector.broadcast %cst_22 : f32 to vector<16x32xf32>
    %26 = arith.maximumf %24, %25 : vector<16x32xf32>
    %c0_23 = arith.constant 0 : index
    %c0_24 = arith.constant 0 : index
    %27 = vector.load %arg4[%c0_23, %c0_24] : memref<8x16xf32, #tpu.memory_space<vmem>>, vector<8x16xf32>
    %cst_25 = arith.constant dense<0.000000e+00> : vector<8x32xf32>
    %28 = tpu.matmul %27, %26, %cst_25 {dimension_numbers = #tpu.dot_dimension_numbers<[1], [0], [0], [1], [0, 0, 1, 1], [], []>} : vector<8x16xf32>, vector<16x32xf32>, vector<8x32xf32> -> vector<8x32xf32>
    %29 = vector.extract_strided_slice %28 {offsets = [0, 0], sizes = [8, 16], strides = [1, 1]} : vector<8x32xf32> to vector<8x16xf32>
    %c0_26 = arith.constant 0 : index
    %c0_27 = arith.constant 0 : index
    %30 = vector.load %arg11[%c0_26, %c0_27] : memref<16x64xf32, #tpu.memory_space<vmem>>, vector<16x64xf32>
    %cst_28 = arith.constant dense<0.000000e+00> : vector<8x64xf32>
    %31 = tpu.matmul %29, %30, %cst_28 {dimension_numbers = #tpu.dot_dimension_numbers<[1], [0], [0], [1], [0, 0, 1, 1], [], []>} : vector<8x16xf32>, vector<16x64xf32>, vector<8x64xf32> -> vector<8x64xf32>
    %c0_29 = arith.constant 0 : index
    %c0_30 = arith.constant 0 : index
    %32 = vector.load %arg12[%c0_29, %c0_30] : memref<8x64xf32, #tpu.memory_space<vmem>>, vector<8x64xf32>
    %33 = arith.mulf %31, %32 : vector<8x64xf32>
    %cst_31 = arith.constant dense<0.000000e+00> : vector<64xf32>
    %34 = vector.multi_reduction <add>, %33, %cst_31 [0] : vector<8x64xf32> to vector<64xf32>
    %35 = vector.shape_cast %34 : vector<64xf32> to vector<1x64xf32>
    %c0_32 = arith.constant 0 : index
    %c0_33 = arith.constant 0 : index
    %36 = vector.load %arg13[%c0_32, %c0_33] : memref<64x8xf32, #tpu.memory_space<vmem>>, vector<64x8xf32>
    %cst_34 = arith.constant dense<0.000000e+00> : vector<1x8xf32>
    %37 = tpu.matmul %35, %36, %cst_34 {dimension_numbers = #tpu.dot_dimension_numbers<[1], [0], [0], [1], [0, 0, 1, 1], [], []>} : vector<1x64xf32>, vector<64x8xf32>, vector<1x8xf32> -> vector<1x8xf32>
    %c0_35 = arith.constant 0 : index
    %c0_36 = arith.constant 0 : index
    %38 = vector.load %arg14[%c0_35, %c0_36] : memref<1x8xf32, #tpu.memory_space<vmem>>, vector<1x8xf32>
    %39 = arith.addf %37, %38 : vector<1x8xf32>
    %40 = vector.extract_strided_slice %28 {offsets = [0, 16], sizes = [8, 16], strides = [1, 1]} : vector<8x32xf32> to vector<8x16xf32>
    %c0_37 = arith.constant 0 : index
    %c0_38 = arith.constant 0 : index
    %41 = vector.load %arg11[%c0_37, %c0_38] : memref<16x64xf32, #tpu.memory_space<vmem>>, vector<16x64xf32>
    %cst_39 = arith.constant dense<0.000000e+00> : vector<8x64xf32>
    %42 = tpu.matmul %40, %41, %cst_39 {dimension_numbers = #tpu.dot_dimension_numbers<[1], [0], [0], [1], [0, 0, 1, 1], [], []>} : vector<8x16xf32>, vector<16x64xf32>, vector<8x64xf32> -> vector<8x64xf32>
    %c0_40 = arith.constant 0 : index
    %c0_41 = arith.constant 0 : index
    %43 = vector.load %arg12[%c0_40, %c0_41] : memref<8x64xf32, #tpu.memory_space<vmem>>, vector<8x64xf32>
    %44 = arith.mulf %42, %43 : vector<8x64xf32>
    %cst_42 = arith.constant dense<0.000000e+00> : vector<64xf32>
    %45 = vector.multi_reduction <add>, %44, %cst_42 [0] : vector<8x64xf32> to vector<64xf32>
    %46 = vector.shape_cast %45 : vector<64xf32> to vector<1x64xf32>
    %c0_43 = arith.constant 0 : index
    %c0_44 = arith.constant 0 : index
    %47 = vector.load %arg13[%c0_43, %c0_44] : memref<64x8xf32, #tpu.memory_space<vmem>>, vector<64x8xf32>
    %cst_45 = arith.constant dense<0.000000e+00> : vector<1x8xf32>
    %48 = tpu.matmul %46, %47, %cst_45 {dimension_numbers = #tpu.dot_dimension_numbers<[1], [0], [0], [1], [0, 0, 1, 1], [], []>} : vector<1x64xf32>, vector<64x8xf32>, vector<1x8xf32> -> vector<1x8xf32>
    %c0_46 = arith.constant 0 : index
    %c0_47 = arith.constant 0 : index
    %49 = vector.load %arg14[%c0_46, %c0_47] : memref<1x8xf32, #tpu.memory_space<vmem>>, vector<1x8xf32>
    %50 = arith.addf %48, %49 : vector<1x8xf32>
    %51 = tpu.concatenate %39, %50 in 0 : vector<1x8xf32>, vector<1x8xf32> -> vector<2x8xf32>
    %c0_48 = arith.constant 0 : index
    %c0_49 = arith.constant 0 : index
    %52 = vector.load %arg15[%c0_48, %c0_49] : memref<8x128xf32, #tpu.memory_space<vmem>>, vector<8x128xf32>
    %cst_50 = arith.constant dense<0.000000e+00> : vector<2x128xf32>
    %53 = tpu.matmul %51, %52, %cst_50 {dimension_numbers = #tpu.dot_dimension_numbers<[1], [0], [0], [1], [0, 0, 1, 1], [], []>} : vector<2x8xf32>, vector<8x128xf32>, vector<2x128xf32> -> vector<2x128xf32>
    %c0_51 = arith.constant 0 : index
    %c0_52 = arith.constant 0 : index
    %54 = vector.load %arg16[%c0_51, %c0_52] : memref<1x128xf32, #tpu.memory_space<vmem>>, vector<1x128xf32>
    %55 = vector.broadcast %54 : vector<1x128xf32> to vector<2x128xf32>
    %56 = arith.addf %53, %55 : vector<2x128xf32>
    %57 = vector.extract_strided_slice %56 {offsets = [0, 0], sizes = [1, 128], strides = [1, 1]} : vector<2x128xf32> to vector<1x128xf32>
    %c0_53 = arith.constant 0 : index
    %c0_54 = arith.constant 0 : index
    %58 = vector.load %arg17[%c0_53, %c0_54] : memref<8x128xf32, #tpu.memory_space<vmem>>, vector<8x128xf32>
    %59 = vector.broadcast %57 : vector<1x128xf32> to vector<8x128xf32>
    %60 = arith.mulf %58, %59 : vector<8x128xf32>
    %c0_55 = arith.constant 0 : index
    %c0_56 = arith.constant 0 : index
    %61 = vector.load %arg18[%c0_55, %c0_56] : memref<128x16xf32, #tpu.memory_space<vmem>>, vector<128x16xf32>
    %cst_57 = arith.constant dense<0.000000e+00> : vector<8x16xf32>
    %62 = tpu.matmul %60, %61, %cst_57 {dimension_numbers = #tpu.dot_dimension_numbers<[1], [0], [0], [1], [0, 0, 1, 1], [], []>} : vector<8x128xf32>, vector<128x16xf32>, vector<8x16xf32> -> vector<8x16xf32>
    %63 = vector.extract_strided_slice %56 {offsets = [1, 0], sizes = [1, 128], strides = [1, 1]} : vector<2x128xf32> to vector<1x128xf32>
    %c0_58 = arith.constant 0 : index
    %c0_59 = arith.constant 0 : index
    %64 = vector.load %arg17[%c0_58, %c0_59] : memref<8x128xf32, #tpu.memory_space<vmem>>, vector<8x128xf32>
    %65 = vector.broadcast %63 : vector<1x128xf32> to vector<8x128xf32>
    %66 = arith.mulf %64, %65 : vector<8x128xf32>
    %c0_60 = arith.constant 0 : index
    %c0_61 = arith.constant 0 : index
    %67 = vector.load %arg18[%c0_60, %c0_61] : memref<128x16xf32, #tpu.memory_space<vmem>>, vector<128x16xf32>
    %cst_62 = arith.constant dense<0.000000e+00> : vector<8x16xf32>
    %68 = tpu.matmul %66, %67, %cst_62 {dimension_numbers = #tpu.dot_dimension_numbers<[1], [0], [0], [1], [0, 0, 1, 1], [], []>} : vector<8x128xf32>, vector<128x16xf32>, vector<8x16xf32> -> vector<8x16xf32>
    %69 = tpu.concatenate %62, %68 in 1 : vector<8x16xf32>, vector<8x16xf32> -> vector<8x32xf32>
    %c0_63 = arith.constant 0 : index
    %c0_64 = arith.constant 0 : index
    %70 = vector.load %arg6[%c0_63, %c0_64] : memref<16x8xf32, #tpu.memory_space<vmem>>, vector<16x8xf32>
    %cst_65 = arith.constant dense<0.000000e+00> : vector<16x32xf32>
    %71 = tpu.matmul %70, %69, %cst_65 {dimension_numbers = #tpu.dot_dimension_numbers<[1], [0], [0], [1], [0, 0, 1, 1], [], []>} : vector<16x8xf32>, vector<8x32xf32>, vector<16x32xf32> -> vector<16x32xf32>
    %c0_66 = arith.constant 0 : index
    %c0_67 = arith.constant 0 : index
    %72 = vector.load %arg2[%c0_66, %c0_67] : memref<16x16xf32, #tpu.memory_space<vmem>>, vector<16x16xf32>
    %cst_68 = arith.constant dense<0.000000e+00> : vector<16x32xf32>
    %73 = tpu.matmul %72, %71, %cst_68 {dimension_numbers = #tpu.dot_dimension_numbers<[1], [0], [0], [1], [0, 0, 1, 1], [], []>} : vector<16x16xf32>, vector<16x32xf32>, vector<16x32xf32> -> vector<16x32xf32>
    %cst_69 = arith.constant dense<0.000000e+00> : vector<16x32xf32>
    %74 = tpu.matmul %72, %73, %cst_69 {dimension_numbers = #tpu.dot_dimension_numbers<[1], [0], [0], [1], [0, 0, 1, 1], [], []>} : vector<16x16xf32>, vector<16x32xf32>, vector<16x32xf32> -> vector<16x32xf32>
    %cst_70 = arith.constant 2.000000e+00 : f32
    %75 = vector.broadcast %cst_70 : f32 to vector<16x32xf32>
    %76 = arith.mulf %75, %74 : vector<16x32xf32>
    %77 = arith.subf %76, %71 : vector<16x32xf32>
    %78 = tpu.concatenate %71, %73, %77 in 1 : vector<16x32xf32>, vector<16x32xf32>, vector<16x32xf32> -> vector<16x96xf32>
    %c0_71 = arith.constant 0 : index
    %c0_72 = arith.constant 0 : index
    %79 = vector.load %arg19[%c0_71, %c0_72] : memref<96x16xf32, #tpu.memory_space<vmem>>, vector<96x16xf32>
    %cst_73 = arith.constant dense<0.000000e+00> : vector<16x16xf32>
    %80 = tpu.matmul %78, %79, %cst_73 {dimension_numbers = #tpu.dot_dimension_numbers<[1], [0], [0], [1], [0, 0, 1, 1], [], []>} : vector<16x96xf32>, vector<96x16xf32>, vector<16x16xf32> -> vector<16x16xf32>
    %c0_74 = arith.constant 0 : index
    %c0_75 = arith.constant 0 : index
    %81 = vector.load %arg21[%c0_74, %c0_75] : memref<1x16xf32, #tpu.memory_space<vmem>>, vector<1x16xf32>
    %82 = vector.broadcast %81 : vector<1x16xf32> to vector<16x16xf32>
    %83 = arith.addf %80, %82 : vector<16x16xf32>
    %cst_76 = arith.constant 0.000000e+00 : f32
    %84 = vector.broadcast %cst_76 : f32 to vector<16x16xf32>
    %85 = arith.maximumf %83, %84 : vector<16x16xf32>
    %c0_77 = arith.constant 0 : index
    %c0_78 = arith.constant 0 : index
    %86 = vector.load %arg5[%c0_77, %c0_78] : memref<32x16xf32, #tpu.memory_space<vmem>>, vector<32x16xf32>
    %cst_79 = arith.constant dense<0.000000e+00> : vector<32x16xf32>
    %87 = tpu.matmul %86, %85, %cst_79 {dimension_numbers = #tpu.dot_dimension_numbers<[1], [0], [0], [1], [0, 0, 1, 1], [], []>} : vector<32x16xf32>, vector<16x16xf32>, vector<32x16xf32> -> vector<32x16xf32>
    %c0_80 = arith.constant 0 : index
    %c0_81 = arith.constant 0 : index
    %88 = vector.load %arg1[%c0_80, %c0_81] : memref<32x32xf32, #tpu.memory_space<vmem>>, vector<32x32xf32>
    %cst_82 = arith.constant dense<0.000000e+00> : vector<32x16xf32>
    %89 = tpu.matmul %88, %87, %cst_82 {dimension_numbers = #tpu.dot_dimension_numbers<[1], [0], [0], [1], [0, 0, 1, 1], [], []>} : vector<32x32xf32>, vector<32x16xf32>, vector<32x16xf32> -> vector<32x16xf32>
    %90 = tpu.concatenate %87, %89 in 1 : vector<32x16xf32>, vector<32x16xf32> -> vector<32x32xf32>
    %c0_83 = arith.constant 0 : index
    %c0_84 = arith.constant 0 : index
    %91 = vector.load %arg20[%c0_83, %c0_84] : memref<32x8xf32, #tpu.memory_space<vmem>>, vector<32x8xf32>
    %cst_85 = arith.constant dense<0.000000e+00> : vector<32x8xf32>
    %92 = tpu.matmul %90, %91, %cst_85 {dimension_numbers = #tpu.dot_dimension_numbers<[1], [0], [0], [1], [0, 0, 1, 1], [], []>} : vector<32x32xf32>, vector<32x8xf32>, vector<32x8xf32> -> vector<32x8xf32>
    %c0_86 = arith.constant 0 : index
    %c0_87 = arith.constant 0 : index
    %93 = vector.load %arg22[%c0_86, %c0_87] : memref<32x8xf32, #tpu.memory_space<vmem>>, vector<32x8xf32>
    tpu.vector_store %arg22[%c0_86, %c0_87], %92 {strides = array<i32>} : memref<32x8xf32, #tpu.memory_space<vmem>>, vector<32x8xf32>,
    return
  }
}

</mosaic_0001>

<bundles_post_ra>
// kernel: tpu_custom_call.1
= control target key start
LH: loop header
LB: loop body
LE: loop exit
PB: predicated region body
PF: predicated region fallthrough
CT: control target
= control target key end

     0   :  { %vm79_vm0 = vcmask 261120   ;;  %s958_s30 = smov 8   ;;  %vm190_vm1 = vcmask 64512   ;;  %vm207_vm2 = vcmask 195584   ;;  %vm195_vm3 = vcmask 130048   ;;  %s1441_s0 = inlined_call_operand.vmem [shape: f32[32,8], index: 0, kind: input, shape index: {}]   ;;  %s1442_s1 = inlined_call_operand.vmem [shape: f32[32,32], index: 1, kind: input, shape index: {}]   ;;  %s1443_s9 = inlined_call_operand.vmem [shape: f32[1,16], index: 9, kind: input, shape index: {}]   ;;  %s1444_s7 = inlined_call_operand.vmem [shape: f32[24,16], index: 7, kind: input, shape index: {}]   ;;  %s1445_s3 = inlined_call_operand.vmem [shape: f32[16,32], index: 3, kind: input, shape index: {}]   ;;  %s1446_s2 = inlined_call_operand.vmem [shape: f32[16,16], index: 2, kind: input, shape index: {}]   ;;  %s1447_s8 = inlined_call_operand.vmem [shape: f32[32,32], index: 8, kind: input, shape index: {}]   ;;  %s1448_s10 = inlined_call_operand.vmem [shape: f32[1,32], index: 10, kind: input, shape index: {}]   ;;  %s1449_s11 = inlined_call_operand.vmem [shape: f32[16,64], index: 11, kind: input, shape index: {}]   ;;  %s1450_s4 = inlined_call_operand.vmem [shape: f32[8,16], index: 4, kind: input, shape index: {}]   ;;  %s1451_s13 = inlined_call_operand.vmem [shape: f32[64,8], index: 13, kind: input, shape index: {}]   ;;  %s1452_s12 = inlined_call_operand.vmem [shape: f32[8,64], index: 12, kind: input, shape index: {}]   ;;  %s1453_s16 = inlined_call_operand.vmem [shape: f32[1,128], index: 16, kind: input, shape index: {}]   ;;  %s1454_s15 = inlined_call_operand.vmem [shape: f32[8,128], index: 15, kind: input, shape index: {}]   ;;  %s1455_s18 = inlined_call_operand.vmem [shape: f32[128,16], index: 18, kind: input, shape index: {}]   ;;  %s1456_s14 = inlined_call_operand.vmem [shape: f32[1,8], index: 14, kind: input, shape index: {}]   ;;  %s1457_s17 = inlined_call_operand.vmem [shape: f32[8,128], index: 17, kind: input, shape index: {}]   ;;  %s1458_s6 = inlined_call_operand.vmem [shape: f32[16,8], index: 6, kind: input, shape index: {}]   ;;  %s1459_s19 = inlined_call_operand.vmem [shape: f32[96,16], index: 19, kind: input, shape index: {}]   ;;  %s1460_s21 = inlined_call_operand.vmem [shape: f32[1,16], index: 21, kind: input, shape index: {}]   ;;  %s1461_s5 = inlined_call_operand.vmem [shape: f32[32,16], index: 5, kind: input, shape index: {}]   ;;  %s1462_s20 = inlined_call_operand.vmem [shape: f32[32,8], index: 20, kind: input, shape index: {}]   ;;  %s1463_s22 = inlined_call_operand.vmem [shape: f32[32,8], index: 22, kind: output, shape index: {}]  }
   0x1   :  { %1470 = sst [smem:[#allocation2_spill]] %s1441_s0  ;;  %vm415_vm4 = vcmask 523264   ;;  %vm513_vm5 = vcmask 1040384   ;;  %vm726_vm6 = vcmask 785408  }
   0x2   :  { %1471 = sst [smem:[#allocation3_spill]] %s1442_s1 }
   0x3   :  { %1472 = sst [smem:[#allocation4_spill]] %s1443_s9 }
   0x4   :  { %1473 = sst [smem:[#allocation5_spill]] %s1444_s7 }
   0x5   :  { %1474 = sst [smem:[#allocation6_spill]] %s1445_s3  ;;  %s959_s3 = smov 16  }
   0x6   :  { %1475 = sst [smem:[#allocation7_spill]] %s1446_s2 }
   0x7   :  { %1476 = sst [smem:[#allocation8_spill]] %s1447_s8 }
   0x8   :  { %s1477_s29 = sld [smem:[#allocation2_spill]] }
   0x9   :  { %s1478_s25 = sld [smem:[#allocation3_spill]] }
   0xa   :  { %s1479_s1 = sld [smem:[#allocation5_spill]] }
   0xb   :  { %s1480_s27 = sld [smem:[#allocation4_spill]] }
   0xc   :  { %s1482_s2 = sld [smem:[#allocation7_spill]] }
   0xd   :  { %s1483_s9 = sld [smem:[#allocation8_spill]] }
   0xe   :  { %v1081_v0 = vld [vmem:[%s1477_s29 + $0x18] sm:$0xff]  ;;  %v1086_v1 = vld [vmem:[%s1477_s29 + $0x10] sm:$0xff]  ;;  %v1092_v2 = vld [vmem:[%s1477_s29 + $0x8] sm:$0xff] }
   0xf   :  { %104 = vmatpush.msra.mxu0 %v1081_v0  ;;  %v71_v3 = vld [vmem:[%s1477_s29] sm:$0xff]  ;;  %v1109_v5 = vld [vmem:[%s1478_s25 + $0x8] sm:$0xff]  ;;  %v1116_v6 = vld [vmem:[%s1478_s25 + $0x10] sm:$0xff]  ;;  %s1481_s29 = sld [smem:[#allocation6_spill]] }
  0x10   :  { %v1102_v4 = vld [vmem:[%s1478_s25] sm:$0xff]  ;;  %v1123_v7 = vld [vmem:[%s1478_s25 + $0x18] sm:$0xff]  ;;  %v202_v24 = vld [vmem:[%s1479_s1 + $0x10] sm:$0xff] }
  0x11   :  { %105 = vmatpush.msra.mxu0 %v1086_v1  ;;  %v201_v25 = vld [vmem:[%s1479_s1 + $0x8] sm:$0xff]  ;;  %233 = vmatpush.msra.mxu2 %v202_v24  ;;  %v200_v26 = vld [vmem:[%s1479_s1] sm:$0xff]  ;;  %v429_v24 = vld [vmem:[%s1451_s13 + $0x30] sm:$0xff] }
  0x12   :  { %v954_v46 = vld [vmem:[%s1480_s27] ss:$0 sm:$0xff]  ;;  %v1187_v61 = vld [vmem:[%s1482_s2 + $0x8] sm:$0xff] }
  0x13   :  { %106 = vmatpush.msra.mxu0 %v1092_v2  ;;  %234 = vmatpush.msra.mxu2 %v201_v25  ;;  %v1180_v60 = vld [vmem:[%s1482_s2] sm:$0xff]  ;;  %v328_v62 = vld [vmem:[%s1483_s9 + $0x18] sm:$0xff]  ;;  %v327_v63 = vld [vmem:[%s1483_s9 + $0x10] sm:$0xff] }
  0x14   :  { %v428_v25 = vld [vmem:[%s1451_s13 + $0x28] sm:$0xff] }
  0x15   :  { %107 = vmatpush.msra.mxu0 %v71_v3  ;;  %235 = vmatpush.msra.mxu2 %v200_v26  ;;  %v253_v56 = vld [vmem:[%s1481_s29] sm:$0xff]  ;;  %v254_v57 = vld [vmem:[%s1481_s29 + $0x8] sm:$0xff] }
  0x16   :  { %905 = vmatmul.msk.f32.vlgmr.msra.gmra.mxu0 %vm79_vm0, %v1102_v4  ;;  %v427_v26 = vld [vmem:[%s1451_s13 + $0x20] sm:$0xff] }
  0x17   :  { %351 = vmatpush.msrb.mxu2 %v328_v62  ;;  %v553_v62 = vld [vmem:[%s1455_s18 + $0x38] sm:$0xff] }
  0x19   :  { %352 = vmatpush.msrb.mxu2 %v327_v63  ;;  %v552_v63 = vld [vmem:[%s1455_s18 + $0x30] sm:$0xff] }
  0x1e   :  { %906 = vmatmul.msk.f32.gmra.mxu0 %vm79_vm0, %v1109_v5 }
  0x26   :  { %907 = vmatmul.msk.f32.gmra.mxu0 %vm79_vm0, %v1116_v6 }
  0x2e   :  { %908 = vmatmul.msk.f32.gmra.mxu0 %vm79_vm0, %v1123_v7 }
  0x93   :  { %v109_v8 = vpop.f32.mrf.mxu0 }
  0x94   :  { %162 = vrot.lane.b32.xlu0 %v109_v8, %s958_s30 }
  0x9b   :  { %v112_v9 = vpop.f32.mrf.mxu0 }
  0x9c   :  { %164 = vrot.lane.b32.xlu1 %v112_v9, %s958_s30 }
  0xa3   :  { %v115_v10 = vpop.f32.mrf.mxu0 }
  0xa4   :  { %166 = vrot.lane.b32.xlu2 %v115_v10, %s958_s30 }
  0xab   :  { %v118_v11 = vpop.f32.mrf.mxu0 }
  0xac   :  { %133 = vmatpush.msra.mxu1 %v118_v11 }
  0xae   :  { %134 = vmatpush.msra.mxu1 %v115_v10 }
  0xb0   :  { %135 = vmatpush.msra.mxu1 %v112_v9 }
  0xb2   :  { %136 = vmatpush.msra.mxu1 %v109_v8 }
  0xb3   :  { %909 = vmatmul.msk.f32.vlgmr.msra.gmra.mxu1 %vm79_vm0, %v1102_v4 }
  0xbb   :  { %910 = vmatmul.msk.f32.gmra.mxu1 %vm79_vm0, %v1109_v5 }
  0xc3   :  { %911 = vmatmul.msk.f32.gmra.mxu1 %vm79_vm0, %v1116_v6 }
  0xcb   :  { %912 = vmatmul.msk.f32.gmra.mxu1 %vm79_vm0, %v1123_v7 }
  0xfe   :  { %v167_v32 = vpop.permute.xlu2 %166 }
  0xff   :  { %v193_v37 = vsel %vm190_vm1, %v1086_v1, %v167_v32  ;;  %v413_v32 = vld [vmem:[%s1452_s12] sm:$0xff]  ;;  %s961_s12 = smov 32  }
 0x106   :  { %v163_v27 = vpop.permute.xlu0 %162 }
 0x107   :  { %v191_v28 = vsel %vm190_vm1, %v71_v3, %v163_v27  ;;  %v426_v27 = vld [vmem:[%s1451_s13 + $0x18] sm:$0xff] }
 0x10e   :  { %v165_v29 = vpop.permute.xlu1 %164 }
 0x10f   :  { %v192_v33 = vsel %vm190_vm1, %v1092_v2, %v165_v29  ;;  %v424_v29 = vld [vmem:[%s1451_s13 + $0x8] sm:$0xff] }
 0x130   :  { %v138_v12 = vpop.f32.mrf.mxu1 }
 0x131   :  { %v150_v13 = vmul.f32 2.0, %v138_v12  ;;  %v389_v12 = vld [vmem:[%s1449_s11 + $0x8] sm:$0xff] }
 0x132   :  { %407 = vmatpush.msrb.mxu1 %v389_v12  ;;  %473 = vmatpush.msrb.mxu0 %v389_v12 }
 0x133   :  { %v154_v14 = vsub.f32 %v150_v13, %v71_v3  ;;  %v325_v3 = vld [vmem:[%s1483_s9] sm:$0xff] }
 0x135   :  { %178 = vrot.lane.b32.xlu0 %v154_v14, %s959_s3  ;;  %v955_v14 = vld [vmem:[%s1448_s10] ss:$0 sm:$0xff]  ;;  %s960_s10 = smov 112  }
 0x138   :  { %v141_v15 = vpop.f32.mrf.mxu1 }
 0x139   :  { %v151_v16 = vmul.f32 2.0, %v141_v15 }
 0x13b   :  { %v155_v17 = vsub.f32 %v151_v16, %v1092_v2 }
 0x13d   :  { %168 = vrot.lane.b32.xlu0 %v118_v11, %s958_s30  ;;  %180 = vrot.lane.b32.xlu1 %v155_v17, %s959_s3 }
 0x140   :  { %v144_v18 = vpop.f32.mrf.mxu1 }
 0x141   :  { %v152_v19 = vmul.f32 2.0, %v144_v18 }
 0x143   :  { %v156_v20 = vsub.f32 %v152_v19, %v1086_v1 }
 0x145   :  { %182 = vrot.lane.b32.xlu2 %v156_v20, %s959_s3  ;;  %v364_v20 = vld [vmem:[%s1450_s4] sm:$0xff] }
 0x148   :  { %v147_v21 = vpop.f32.mrf.mxu1 }
 0x149   :  { %v153_v22 = vmul.f32 2.0, %v147_v21  ;;  %v388_v21 = vld [vmem:[%s1449_s11] sm:$0xff] }
 0x14a   :  { %408 = vmatpush.msrb.mxu1 %v388_v21  ;;  %474 = vmatpush.msrb.mxu0 %v388_v21 }
 0x14b   :  { %v157_v23 = vsub.f32 %v153_v22, %v1081_v0 }
 0x14d   :  { %184 = vrot.lane.b32.xlu1 %v157_v23, %s959_s3  ;;  %v430_v23 = vld [vmem:[%s1451_s13 + $0x38] sm:$0xff] }
 0x19f   :  { %v183_v36 = vpop.permute.xlu2 %182 }
 0x1a0   :  { %v198_v38 = vsel %vm195_vm3, %v193_v37, %v183_v36 }
 0x1a7   :  { %v179_v30 = vpop.permute.xlu0 %178 }
 0x1a8   :  { %v196_v31 = vsel %vm195_vm3, %v191_v28, %v179_v30  ;;  %v425_v28 = vld [vmem:[%s1451_s13 + $0x10] sm:$0xff]  ;;  %v423_v30 = vld [vmem:[%s1451_s13] sm:$0xff] }
 0x1a9   :  { %913 = vmatmul.msk.f32.vlgmr.msra.gmra.mxu2 %vm207_vm2, %v196_v31 }
 0x1af   :  { %v181_v34 = vpop.permute.xlu1 %180  ;;  %v169_v39 = vpop.permute.xlu0 %168 }
 0x1b0   :  { %v197_v35 = vsel %vm195_vm3, %v192_v33, %v181_v34  ;;  %v194_v40 = vsel %vm190_vm1, %v1081_v0, %v169_v39  ;;  %v326_v0 = vld [vmem:[%s1483_s9 + $0x8] sm:$0xff] }
 0x1b1   :  { %914 = vmatmul.msk.f32.gmra.mxu2 %vm207_vm2, %v197_v35 }
 0x1b2   :  { %353 = vmatpush.msrb.mxu2 %v326_v0  ;;  %v551_v0 = vld [vmem:[%s1455_s18 + $0x28] sm:$0xff] }
 0x1b4   :  { %354 = vmatpush.msrb.mxu2 %v325_v3 }
 0x1b9   :  { %915 = vmatmul.msk.f32.gmra.mxu2 %vm207_vm2, %v198_v38 }
 0x1bf   :  { %v185_v41 = vpop.permute.xlu1 %184 }
 0x1c0   :  { %v199_v42 = vsel %vm195_vm3, %v194_v40, %v185_v41 }
 0x1c1   :  { %916 = vmatmul.msk.f32.gmra.mxu2 %vm207_vm2, %v199_v42 }
 0x22c   :  { %v237_v43 = vpop.f32.mrf.mxu2 }
 0x22d   :  { %v238_v52 = vadd.f32 %v954_v46, %v237_v43 }
 0x22f   :  { %v249_v55 = vmax.f32 %v238_v52, 0.0  ;;  %v561_v52 = vld [vmem:[%s1455_s18 + $0x78] sm:$0xff] }
 0x230   :  { %584 = vmatpush.msra.mxu0 %v561_v52 }
 0x234   :  { %v240_v44 = vpop.f32.mrf.mxu2 }
 0x235   :  { %v241_v50 = vadd.f32 %v954_v46, %v240_v44 }
 0x237   :  { %v250_v54 = vmax.f32 %v241_v50, 0.0 }
 0x23c   :  { %v243_v45 = vpop.f32.mrf.mxu2 }
 0x23d   :  { %v244_v48 = vadd.f32 %v954_v46, %v243_v45 }
 0x23f   :  { %v251_v53 = vmax.f32 %v244_v48, 0.0 }
 0x244   :  { %v246_v47 = vpop.f32.mrf.mxu2 }
 0x245   :  { %v247_v49 = vadd.f32 %v954_v46, %v246_v47 }
 0x247   :  { %v252_v51 = vmax.f32 %v247_v49, 0.0 }
 0x249   :  { %273 = vmatpush.msra.mxu3 %v252_v51  ;;  %v515_v51 = vld [vmem:[%s1454_s15] sm:$0xff] }
 0x24a   :  { %538 = vmatpush.msra.mxu1 %v515_v51 }
 0x24b   :  { %274 = vmatpush.msra.mxu3 %v251_v53  ;;  %v560_v53 = vld [vmem:[%s1455_s18 + $0x70] sm:$0xff] }
 0x24c   :  { %585 = vmatpush.msra.mxu0 %v560_v53 }
 0x24d   :  { %275 = vmatpush.msra.mxu3 %v250_v54  ;;  %v559_v54 = vld [vmem:[%s1455_s18 + $0x68] sm:$0xff] }
 0x24e   :  { %586 = vmatpush.msra.mxu0 %v559_v54 }
 0x24f   :  { %276 = vmatpush.msra.mxu3 %v249_v55  ;;  %v558_v55 = vld [vmem:[%s1455_s18 + $0x60] sm:$0xff] }
 0x250   :  { %917 = vmatmul.msk.f32.vlgmr.msra.gmra.mxu3 %vm79_vm0, %v253_v56  ;;  %v557_v56 = vld [vmem:[%s1455_s18 + $0x58] sm:$0xff]  ;;  %587 = vmatpush.msra.mxu0 %v558_v55 }
 0x252   :  { %588 = vmatpush.msra.mxu0 %v557_v56 }
 0x258   :  { %918 = vmatmul.msk.f32.gmra.mxu3 %vm79_vm0, %v254_v57  ;;  %v556_v57 = vld [vmem:[%s1455_s18 + $0x50] sm:$0xff] }
 0x259   :  { %589 = vmatpush.msra.mxu0 %v556_v57 }
 0x2d3   :  { %v278_v58 = vpop.f32.mrf.mxu3 }
 0x2db   :  { %v281_v59 = vpop.f32.mrf.mxu3 }
 0x2dc   :  { %306 = vmatpush.msrb.mxu3 %v281_v59 }
 0x2de   :  { %307 = vmatpush.msrb.mxu3 %v278_v58 }
 0x2df   :  { %919 = vmatmul.msk.f32.vlgmr.msrb.gmra.mxu3 %vm195_vm3, %v1180_v60 }
 0x2e0   :  { %443 = vmatpush.msra.mxu3 %v430_v23 }
 0x2e2   :  { %444 = vmatpush.msra.mxu3 %v429_v24 }
 0x2e4   :  { %445 = vmatpush.msra.mxu3 %v428_v25 }
 0x2e6   :  { %446 = vmatpush.msra.mxu3 %v427_v26 }
 0x2e7   :  { %920 = vmatmul.msk.f32.gmra.mxu3 %vm195_vm3, %v1187_v61 }
 0x2e8   :  { %447 = vmatpush.msra.mxu3 %v426_v27 }
 0x2ea   :  { %448 = vmatpush.msra.mxu3 %v425_v28 }
 0x2ec   :  { %449 = vmatpush.msra.mxu3 %v424_v29 }
 0x2ee   :  { %450 = vmatpush.msra.mxu3 %v423_v30 }
 0x2f0   :  { %562 = vmatpush.msrb.mxu3 %v561_v52 }
 0x2f2   :  { %563 = vmatpush.msrb.mxu3 %v560_v53 }
 0x2f4   :  { %564 = vmatpush.msrb.mxu3 %v559_v54 }
 0x2f6   :  { %565 = vmatpush.msrb.mxu3 %v558_v55 }
 0x2f8   :  { %566 = vmatpush.msrb.mxu3 %v557_v56 }
 0x2fa   :  { %567 = vmatpush.msrb.mxu3 %v556_v57 }
 0x362   :  { %v309_v1 = vpop.f32.mrf.mxu3 }
 0x363   :  { %317 = vrot.lane.b32.xlu2 %v309_v1, %s959_s3  ;;  %v550_v1 = vld [vmem:[%s1455_s18 + $0x20] sm:$0xff] }
 0x36a   :  { %v312_v2 = vpop.f32.mrf.mxu3 }
 0x36b   :  { %319 = vrot.lane.b32.xlu0 %v312_v2, %s959_s3  ;;  %v431_v2 = vld [vmem:[%s1456_s14] sm:$0x1] }
 0x3bd   :  { %v318_v8 = vpop.permute.xlu2 %317 }
 0x3be   :  { %v323_v9 = vsel %vm195_vm3, %v278_v58, %v318_v8  ;;  %v555_v58 = vld [vmem:[%s1455_s18 + $0x48] sm:$0xff] }
 0x3bf   :  { %921 = vmatmul.msk.f32.vlgmr.msrb.gmra.mxu2 %vm79_vm0, %v323_v9  ;;  %568 = vmatpush.msrb.mxu3 %v555_v58 }
 0x3c0   :  { %590 = vmatpush.msra.mxu0 %v555_v58 }
 0x3dd   :  { %v320_v10 = vpop.permute.xlu0 %319 }
 0x3de   :  { %v324_v11 = vsel %vm195_vm3, %v281_v59, %v320_v10  ;;  %v554_v59 = vld [vmem:[%s1455_s18 + $0x40] sm:$0xff] }
 0x3df   :  { %922 = vmatmul.msk.f32.gmra.mxu2 %vm79_vm0, %v324_v11  ;;  %569 = vmatpush.msrb.mxu3 %v554_v59 }
 0x3e0   :  { %591 = vmatpush.msra.mxu0 %v554_v59 }
 0x3e1   :  { %570 = vmatpush.msrb.mxu3 %v553_v62 }
 0x3e2   :  { %592 = vmatpush.msra.mxu0 %v553_v62  ;;  %v957_v62 = vld [vmem:[%s1460_s21] ss:$0 sm:$0xff] }
 0x3e3   :  { %571 = vmatpush.msrb.mxu3 %v552_v63 }
 0x3e4   :  { %593 = vmatpush.msra.mxu0 %v552_v63 }
 0x3e5   :  { %572 = vmatpush.msrb.mxu3 %v551_v0 }
 0x3e6   :  { %594 = vmatpush.msra.mxu0 %v551_v0 }
 0x3e7   :  { %573 = vmatpush.msrb.mxu3 %v550_v1 }
 0x3e8   :  { %595 = vmatpush.msra.mxu0 %v550_v1 }
 0x442   :  { %v356_v13 = vpop.f32.mrf.mxu2 }
 0x443   :  { %v357_v16 = vadd.f32 %v955_v14, %v356_v13  ;;  %v549_v13 = vld [vmem:[%s1455_s18 + $0x18] sm:$0xff] }
 0x444   :  { %574 = vmatpush.msrb.mxu3 %v549_v13  ;;  %596 = vmatpush.msra.mxu0 %v549_v13 }
 0x445   :  { %v362_v19 = vmax.f32 %v357_v16, 0.0  ;;  %v546_v16 = vld [vmem:[%s1455_s18] sm:$0xff] }
 0x462   :  { %v359_v15 = vpop.f32.mrf.mxu2 }
 0x463   :  { %v360_v17 = vadd.f32 %v955_v14, %v359_v15  ;;  %v548_v14 = vld [vmem:[%s1455_s18 + $0x10] sm:$0xff]  ;;  %v547_v15 = vld [vmem:[%s1455_s18 + $0x8] sm:$0xff] }
 0x464   :  { %575 = vmatpush.msrb.mxu3 %v548_v14  ;;  %597 = vmatpush.msra.mxu0 %v548_v14 }
 0x465   :  { %v363_v18 = vmax.f32 %v360_v17, 0.0  ;;  %v956_v17 = vld [vmem:[%s1453_s16] ss:$0 sm:$0xff]  ;;  %s962_s16 = smov 64  }
 0x466   :  { %576 = vmatpush.msrb.mxu3 %v547_v15  ;;  %598 = vmatpush.msra.mxu0 %v547_v15 }
 0x467   :  { %382 = vmatpush.msra.mxu2 %v363_v18 }
 0x468   :  { %577 = vmatpush.msrb.mxu3 %v546_v16  ;;  %599 = vmatpush.msra.mxu0 %v546_v16 }
 0x469   :  { %383 = vmatpush.msra.mxu2 %v362_v19 }
 0x46a   :  { %923 = vmatmul.msk.f32.vlgmr.msra.gmra.mxu2 %vm195_vm3, %v364_v20  ;;  %v543_v20 = vld [vmem:[%s1457_s17] sm:$0xff] }
 0x46b   :  { %498 = vmatpush.msrb.mxu2 %v430_v23 }
 0x46d   :  { %499 = vmatpush.msrb.mxu2 %v429_v24 }
 0x46f   :  { %500 = vmatpush.msrb.mxu2 %v428_v25 }
 0x471   :  { %501 = vmatpush.msrb.mxu2 %v427_v26 }
 0x473   :  { %502 = vmatpush.msrb.mxu2 %v426_v27 }
 0x475   :  { %503 = vmatpush.msrb.mxu2 %v425_v28  ;;  %v609_v28 = vld [vmem:[%s1458_s6] sm:$0xff] }
 0x477   :  { %504 = vmatpush.msrb.mxu2 %v424_v29 }
 0x479   :  { %505 = vmatpush.msrb.mxu2 %v423_v30  ;;  %v610_v30 = vld [vmem:[%s1458_s6 + $0x8] sm:$0xff] }
 0x4ed   :  { %v385_v22 = vpop.f32.mrf.mxu2 }
 0x4ee   :  { %455 = vrot.lane.b32.xlu1 %v385_v22, %s960_s10  ;;  %924 = vmatmul.msk.f32.vlgmr.msrb.gmra.mxu1 %vm195_vm3, %v385_v22 }
 0x560   :  { %v456_v31 = vpop.permute.xlu1 %455 }
 0x561   :  { %926 = vmatmul.msk.f32.vlgmr.msrb.gmra.mxu0 %vm195_vm3, %v456_v31 }
 0x56b   :  { %v410_v33 = vpop.f32.mrf.mxu1 }
 0x56c   :  { %v414_v34 = vmul.f32 %v413_v32, %v410_v33 }
 0x56e   :  { %v416_v35 = vsel %vm415_vm4, %v414_v34, 0.0 }
 0x56f   :  { %v417_v36 = vrot.slane %v416_v35, 4 }
 0x571   :  { %v418_v37 = vadd.f32 %v417_v36, %v416_v35  ;;  %v721_v35 = vld [vmem:[%s1459_s19 + $0x58] sm:$0xff]  ;;  %v720_v36 = vld [vmem:[%s1459_s19 + $0x50] sm:$0xff] }
 0x573   :  { %v419_v38 = vrot.slane %v418_v37, 2 }
 0x575   :  { %v420_v39 = vadd.f32 %v419_v38, %v418_v37  ;;  %v719_v37 = vld [vmem:[%s1459_s19 + $0x48] sm:$0xff]  ;;  %v716_v38 = vld [vmem:[%s1459_s19 + $0x30] sm:$0xff] }
 0x577   :  { %v421_v40 = vrot.slane %v420_v39, 1 }
 0x579   :  { %v422_v41 = vadd.f32 %v421_v40, %v420_v39  ;;  %v715_v39 = vld [vmem:[%s1459_s19 + $0x28] sm:$0xff]  ;;  %v714_v40 = vld [vmem:[%s1459_s19 + $0x20] sm:$0xff] }
 0x57b   :  { %925 = vmatmul.msk.f32.vlgmr.msra.gmra.mxu3 %vm415_vm4, %v422_v41  ;;  %v713_v41 = vld [vmem:[%s1459_s19 + $0x18] sm:$0xff] }
 0x5de   :  { %v476_v42 = vpop.f32.mrf.mxu0 }
 0x5df   :  { %v479_v43 = vmul.f32 %v476_v42, %v413_v32  ;;  %v712_v42 = vld [vmem:[%s1459_s19 + $0x10] sm:$0xff] }
 0x5e1   :  { %v480_v44 = vsel %vm415_vm4, %v479_v43, 0.0  ;;  %v711_v43 = vld [vmem:[%s1459_s19 + $0x8] sm:$0xff] }
 0x5e2   :  { %v481_v45 = vrot.slane %v480_v44, 4 }
 0x5e4   :  { %v482_v46 = vadd.f32 %v481_v45, %v480_v44 }
 0x5e6   :  { %v483_v47 = vrot.slane %v482_v46, 2 }
 0x5e8   :  { %v484_v48 = vadd.f32 %v483_v47, %v482_v46 }
 0x5ea   :  { %v485_v49 = vrot.slane %v484_v48, 1 }
 0x5ec   :  { %v486_v50 = vadd.f32 %v485_v49, %v484_v48 }
 0x5ee   :  { %927 = vmatmul.msk.f32.vlgmr.msrb.gmra.mxu2 %vm415_vm4, %v486_v50  ;;  %v710_v50 = vld [vmem:[%s1459_s19] sm:$0xff] }
 0x5fe   :  { %v452_v3 = vpop.f32.mrf.mxu3 }
 0x5ff   :  { %v453_v10 = vadd.f32 %v452_v3, %v431_v2 }
 0x671   :  { %v507_v8 = vpop.f32.mrf.mxu2 }
 0x672   :  { %v508_v9 = vadd.f32 %v507_v8, %v431_v2  ;;  %v758_v8 = vld [vmem:[%s1461_s5] sm:$0xff] }
 0x674   :  { %v511_v11 = vrot.slane %v508_v9, 7  ;;  %v759_v9 = vld [vmem:[%s1461_s5 + $0x8] sm:$0xff] }
 0x676   :  { %v514_v12 = vsel %vm513_vm5, %v453_v10, %v511_v11  ;;  %v760_v10 = vld [vmem:[%s1461_s5 + $0x10] sm:$0xff]  ;;  %v761_v11 = vld [vmem:[%s1461_s5 + $0x18] sm:$0xff] }
 0x677   :  { %928 = vmatmul.msk.f32.vlgmr.msra.gmra.mxu1 %vm190_vm1, %v514_v12 }
 0x6f4   :  { %v540_v18 = vpop.f32.mrf.mxu1 }
 0x6f5   :  { %v541_v19 = vadd.f32 %v956_v17, %v540_v18 }
 0x6f7   :  { %v544_v21 = vperm.slane %v541_v19, 0  ;;  %v582_v22 = vperm.slane %v541_v19, 1 }
 0x6f9   :  { %v545_v23 = vmul.f32 %v544_v21, %v543_v20  ;;  %v583_v24 = vmul.f32 %v582_v22, %v543_v20 }
 0x6fb   :  { %578 = vmatmul.f32.vlgmr.msrb.gmra.mxu3 %v545_v23  ;;  %600 = vmatmul.f32.vlgmr.msra.gmra.mxu0 %v583_v24 }
 0x778   :  { %v601_v25 = vpop.f32.mrf.mxu0 }
 0x779   :  { %605 = vrot.lane.b32.xlu2 %v601_v25, %s959_s3 }
 0x77e   :  { %v579_v26 = vpop.f32.mrf.mxu3 }
 0x7d3   :  { %v606_v27 = vpop.permute.xlu2 %605 }
 0x7d4   :  { %v608_v29 = vsel %vm195_vm3, %v579_v26, %v606_v27 }
 0x7d5   :  { %632 = vmatpush.msrb.mxu1 %v608_v29 }
 0x7d6   :  { %929 = vmatmul.msk.f32.vlgmr.msrb.gmra.mxu1 %vm190_vm1, %v609_v28 }
 0x7de   :  { %930 = vmatmul.msk.f32.gmra.mxu1 %vm190_vm1, %v610_v30 }
 0x853   :  { %v634_v31 = vpop.f32.mrf.mxu1 }
 0x85b   :  { %v637_v32 = vpop.f32.mrf.mxu1 }
 0x85c   :  { %654 = vmatpush.msra.mxu2 %v637_v32 }
 0x85e   :  { %655 = vmatpush.msra.mxu2 %v634_v31 }
 0x85f   :  { %931 = vmatmul.msk.f32.vlgmr.msra.gmra.mxu2 %vm195_vm3, %v1180_v60 }
 0x860   :  { %737 = vmatpush.msrb.mxu2 %v721_v35 }
 0x862   :  { %738 = vmatpush.msrb.mxu2 %v720_v36 }
 0x864   :  { %739 = vmatpush.msrb.mxu2 %v719_v37 }
 0x867   :  { %932 = vmatmul.msk.f32.gmra.mxu2 %vm195_vm3, %v1187_v61 }
 0x8e2   :  { %v657_v33 = vpop.f32.mrf.mxu2 }
 0x8e3   :  { %692 = vrot.lane.b32.xlu0 %v657_v33, %s961_s12 }
 0x8ea   :  { %v660_v34 = vpop.f32.mrf.mxu2 }
 0x8eb   :  { %694 = vrot.lane.b32.xlu2 %v660_v34, %s961_s12  ;;  %677 = vmatpush.msra.mxu1 %v660_v34 }
 0x8ed   :  { %678 = vmatpush.msra.mxu1 %v657_v33 }
 0x8ee   :  { %933 = vmatmul.msk.f32.vlgmr.msra.gmra.mxu1 %vm195_vm3, %v1180_v60  ;;  %v718_v60 = vld [vmem:[%s1459_s19 + $0x40] sm:$0xff] }
 0x8ef   :  { %740 = vmatpush.msrb.mxu2 %v718_v60 }
 0x8f6   :  { %934 = vmatmul.msk.f32.gmra.mxu1 %vm195_vm3, %v1187_v61  ;;  %v717_v61 = vld [vmem:[%s1459_s19 + $0x38] sm:$0xff] }
 0x8f7   :  { %741 = vmatpush.msrb.mxu2 %v717_v61 }
 0x8f9   :  { %742 = vmatpush.msrb.mxu2 %v716_v38 }
 0x8fb   :  { %743 = vmatpush.msrb.mxu2 %v715_v39 }
 0x8fd   :  { %744 = vmatpush.msrb.mxu2 %v714_v40 }
 0x8ff   :  { %745 = vmatpush.msrb.mxu2 %v713_v41 }
 0x901   :  { %746 = vmatpush.msrb.mxu2 %v712_v42 }
 0x903   :  { %747 = vmatpush.msrb.mxu2 %v711_v43 }
 0x905   :  { %748 = vmatpush.msrb.mxu2 %v710_v50 }
 0x945   :  { %v695_v55 = vpop.permute.xlu2 %694 }
 0x946   :  { %v707_v56 = vsel %vm79_vm0, %v637_v32, %v695_v55 }
 0x955   :  { %v693_v51 = vpop.permute.xlu0 %692 }
 0x956   :  { %v706_v52 = vsel %vm79_vm0, %v634_v31, %v693_v51 }
 0x96b   :  { %v680_v44 = vpop.f32.mrf.mxu1 }
 0x96c   :  { %v686_v45 = vmul.f32 2.0, %v680_v44 }
 0x96e   :  { %v688_v46 = vsub.f32 %v686_v45, %v634_v31 }
 0x970   :  { %700 = vrot.lane.b32.xlu1 %v688_v46, %s962_s16 }
 0x973   :  { %v683_v47 = vpop.f32.mrf.mxu1 }
 0x974   :  { %v687_v48 = vmul.f32 2.0, %v683_v47 }
 0x976   :  { %v689_v49 = vsub.f32 %v687_v48, %v637_v32 }
 0x978   :  { %702 = vrot.lane.b32.xlu0 %v689_v49, %s962_s16 }
 0x9e2   :  { %v701_v53 = vpop.permute.xlu1 %700 }
 0x9e3   :  { %v708_v54 = vsel %vm415_vm4, %v706_v52, %v701_v53 }
 0x9e4   :  { %935 = vmatmul.msk.f32.vlgmr.msrb.gmra.mxu2 %vm726_vm6, %v708_v54 }
 0x9ea   :  { %v703_v57 = vpop.permute.xlu0 %702 }
 0x9eb   :  { %v709_v58 = vsel %vm415_vm4, %v707_v56, %v703_v57 }
 0x9ec   :  { %936 = vmatmul.msk.f32.gmra.mxu2 %vm726_vm6, %v709_v58 }
 0xa67   :  { %v750_v59 = vpop.f32.mrf.mxu2 }
 0xa68   :  { %v751_v0 = vadd.f32 %v957_v62, %v750_v59 }
 0xa6a   :  { %v756_v3 = vmax.f32 %v751_v0, 0.0 }
 0xa6f   :  { %v753_v63 = vpop.f32.mrf.mxu2 }
 0xa70   :  { %v754_v1 = vadd.f32 %v957_v62, %v753_v63 }
 0xa72   :  { %v757_v2 = vmax.f32 %v754_v1, 0.0 }
 0xa74   :  { %788 = vmatpush.msra.mxu3 %v757_v2 }
 0xa76   :  { %789 = vmatpush.msra.mxu3 %v756_v3 }
 0xa77   :  { %937 = vmatmul.msk.f32.vlgmr.msra.gmra.mxu3 %vm195_vm3, %v758_v8 }
 0xa7f   :  { %938 = vmatmul.msk.f32.gmra.mxu3 %vm195_vm3, %v759_v9 }
 0xa87   :  { %939 = vmatmul.msk.f32.gmra.mxu3 %vm195_vm3, %v760_v10 }
 0xa8f   :  { %940 = vmatmul.msk.f32.gmra.mxu3 %vm195_vm3, %v761_v11 }
 0xafa   :  { %v791_v12 = vpop.f32.mrf.mxu3 }
 0xb02   :  { %v794_v13 = vpop.f32.mrf.mxu3 }
 0xb0a   :  { %v797_v14 = vpop.f32.mrf.mxu3 }
 0xb12   :  { %v800_v15 = vpop.f32.mrf.mxu3 }
 0xb13   :  { %815 = vmatpush.msrb.mxu0 %v800_v15 }
 0xb15   :  { %816 = vmatpush.msrb.mxu0 %v797_v14 }
 0xb17   :  { %817 = vmatpush.msrb.mxu0 %v794_v13 }
 0xb19   :  { %818 = vmatpush.msrb.mxu0 %v791_v12 }
 0xb1a   :  { %941 = vmatmul.msk.f32.vlgmr.msrb.gmra.mxu0 %vm79_vm0, %v1102_v4  ;;  %v855_v4 = vld [vmem:[%s1462_s20 + $0x18] sm:$0xff] }
 0xb1b   :  { %880 = vmatpush.msrb.mxu1 %v855_v4 }
 0xb22   :  { %942 = vmatmul.msk.f32.gmra.mxu0 %vm79_vm0, %v1109_v5  ;;  %v854_v5 = vld [vmem:[%s1462_s20 + $0x10] sm:$0xff] }
 0xb23   :  { %881 = vmatpush.msrb.mxu1 %v854_v5 }
 0xb2a   :  { %943 = vmatmul.msk.f32.gmra.mxu0 %vm79_vm0, %v1116_v6  ;;  %v853_v6 = vld [vmem:[%s1462_s20 + $0x8] sm:$0xff] }
 0xb2b   :  { %882 = vmatpush.msrb.mxu1 %v853_v6 }
 0xb32   :  { %944 = vmatmul.msk.f32.gmra.mxu0 %vm79_vm0, %v1123_v7  ;;  %v852_v7 = vld [vmem:[%s1462_s20] sm:$0xff] }
 0xb33   :  { %883 = vmatpush.msrb.mxu1 %v852_v7 }
 0xb97   :  { %v820_v16 = vpop.f32.mrf.mxu0 }
 0xb98   :  { %836 = vrot.lane.b32.xlu1 %v820_v16, %s959_s3 }
 0xb9f   :  { %v823_v17 = vpop.f32.mrf.mxu0 }
 0xba0   :  { %838 = vrot.lane.b32.xlu2 %v823_v17, %s959_s3 }
 0xba7   :  { %v826_v18 = vpop.f32.mrf.mxu0 }
 0xba8   :  { %840 = vrot.lane.b32.xlu0 %v826_v18, %s959_s3 }
 0xbaf   :  { %v829_v19 = vpop.f32.mrf.mxu0 }
 0xbb0   :  { %842 = vrot.lane.b32.xlu1 %v829_v19, %s959_s3 }
 0xbfa   :  { %v839_v22 = vpop.permute.xlu2 %838 }
 0xbfb   :  { %v849_v23 = vsel %vm195_vm3, %v794_v13, %v839_v22 }
 0xc0a   :  { %v837_v20 = vpop.permute.xlu1 %836 }
 0xc0b   :  { %v848_v21 = vsel %vm195_vm3, %v791_v12, %v837_v20 }
 0xc0c   :  { %945 = vmatmul.msk.f32.vlgmr.msrb.gmra.mxu1 %vm79_vm0, %v848_v21 }
 0xc14   :  { %946 = vmatmul.msk.f32.gmra.mxu1 %vm79_vm0, %v849_v23 }
 0xc1a   :  { %v841_v24 = vpop.permute.xlu0 %840 }
 0xc1b   :  { %v850_v25 = vsel %vm195_vm3, %v797_v14, %v841_v24 }
 0xc1c   :  { %947 = vmatmul.msk.f32.gmra.mxu1 %vm79_vm0, %v850_v25 }
 0xc22   :  { %v843_v26 = vpop.permute.xlu1 %842 }
 0xc23   :  { %v851_v27 = vsel %vm195_vm3, %v800_v15, %v843_v26 }
 0xc24   :  { %948 = vmatmul.msk.f32.gmra.mxu1 %vm79_vm0, %v851_v27 }
 0xc89   :  { %v885_v28 = vpop.f32.mrf.mxu1 }
 0xc8a   :  { %897 = vst.msk [vmem:[%s1463_s22] sm:$0xff] %vm190_vm1, %v885_v28 }
 0xc91   :  { %v888_v29 = vpop.f32.mrf.mxu1 }
 0xc92   :  { %898 = vst.msk [vmem:[%s1463_s22 + $0x8] sm:$0xff] %vm190_vm1, %v888_v29 }
 0xc99   :  { %v891_v30 = vpop.f32.mrf.mxu1 }
 0xc9a   :  { %899 = vst.msk [vmem:[%s1463_s22 + $0x10] sm:$0xff] %vm190_vm1, %v891_v30 }
 0xca1   :  { %v894_v31 = vpop.f32.mrf.mxu1 }
 0xca2   :  { %900 = vst.msk [vmem:[%s1463_s22 + $0x18] sm:$0xff] %vm190_vm1, %v894_v31 }

</bundles_post_ra>
